<compile_context>
chip_gen: v7x
topology: tpu7x:2x2x1
jax: 0.10.0
libtpu: 0.0.40
codegen_flags: <defaults>
</compile_context>

<pallas_src>
import functools

import jax
import jax.numpy as jnp
from jax import lax
from jax.experimental import pallas as pl
from jax.experimental.pallas import tpu as pltpu

_LANE = 128


def _round_up(x: int, m: int) -> int:
    return (x + m - 1) // m * m


def _cmd_tile_kernel(x1_ref, x2_ref, out_ref, *, n_moments: int, d_total: int,
                     td: int, chunk: int, rows: int):
    """One feature tile: per-moment sum-of-squared-differences, folded to 128 lanes."""
    tile = pl.program_id(0)
    valid_cols = d_total - tile * td        # columns of this tile that are real data

    n1 = x1_ref.shape[0]
    n2 = x2_ref.shape[0]
    inv_n1 = jnp.float32(1.0 / n1)
    inv_n2 = jnp.float32(1.0 / n2)

    n_chunks = td // chunk                  # chunk divides td by construction
    folds = chunk // _LANE                  # >= 1, chunk is a multiple of 128

    # Per-moment lane-folded accumulators (kept vector shaped; no scalar RMW).
    accs = [jnp.zeros((1, _LANE), jnp.float32) for _ in range(n_moments)]

    for j in range(n_chunks):
        col0 = j * chunk
        x1 = x1_ref[:, pl.ds(col0, chunk)].astype(jnp.float32)   # (n1, chunk)
        x2 = x2_ref[:, pl.ds(col0, chunk)].astype(jnp.float32)   # (n2, chunk)

        # Edge blocks read unspecified memory past the true feature dim; zero
        # those columns (zeroed columns contribute nothing to any moment).
        lane = lax.broadcasted_iota(jnp.int32, (1, chunk), 1) + col0
        ok = lane < valid_cols
        x1 = jnp.where(ok, x1, 0.0)
        x2 = jnp.where(ok, x2, 0.0)

        # First raw moment (per-feature mean over the batch axis).
        mx1 = jnp.sum(x1, axis=0, keepdims=True) * inv_n1        # (1, chunk)
        mx2 = jnp.sum(x2, axis=0, keepdims=True) * inv_n2
        sx1 = x1 - mx1
        sx2 = x2 - mx2

        def fold(dv):
            # (1, chunk) difference vector -> (1, 128) sum of squares, folding
            # 128-aligned lane slices (no cross-lane relayout needed).
            d2 = dv * dv
            acc = d2[:, 0:_LANE]
            for f in range(1, folds):
                acc = acc + d2[:, f * _LANE:(f + 1) * _LANE]
            return acc

        accs[0] = accs[0] + fold(mx1 - mx2)

        # Higher central moments k = 2 .. n_moments via running products.
        p1 = sx1
        p2 = sx2
        for m in range(n_moments - 1):
            p1 = p1 * sx1                    # p1 == sx1 ** (m + 2)
            p2 = p2 * sx2                    # p2 == sx2 ** (m + 2)
            ss1 = jnp.sum(p1, axis=0, keepdims=True) * inv_n1
            ss2 = jnp.sum(p2, axis=0, keepdims=True) * inv_n2
            accs[m + 1] = accs[m + 1] + fold(ss1 - ss2)

    if rows > n_moments:
        accs = accs + [jnp.zeros((1, _LANE), jnp.float32)] * (rows - n_moments)
    # Single lane-dense store of this tile's partials (rows x 128).
    out_ref[...] = jnp.concatenate(accs, axis=0)


def cmd(x1: jax.Array, x2: jax.Array, n_moments: int) -> jax.Array:
    """CMD between two (N, D) batches; returns a scalar f32."""
    assert x1.ndim == 2 and x2.ndim == 2 and x1.shape[1] == x2.shape[1]
    assert n_moments >= 1
    n1, d = x1.shape
    n2, _ = x2.shape
    itemsize = max(jnp.dtype(x1.dtype).itemsize, jnp.dtype(x2.dtype).itemsize)
    rows_total = n1 + n2

    # Generation-aware VMEM budget (v7x has 64 MiB; v5e/v6e have 128 MiB).
    try:
        info = pltpu.get_tpu_info()
        vmem_cap = int(getattr(info, "vmem_capacity_bytes", 64 * 1024 * 1024))
    except Exception:  # pragma: no cover - be conservative off-TPU / old jax
        vmem_cap = 64 * 1024 * 1024
    budget = max(vmem_cap // 2, 8 * 1024 * 1024)

    # Largest feature tile the double-buffered inputs allow.
    max_td_budget = (budget // max(1, 2 * rows_total * itemsize)) // _LANE * _LANE
    if max_td_budget < _LANE:
        # TODO(synk): tile the batch axis (raw power sums + binomial expansion)
        # for huge batches instead of falling back to plain XLA.
        return cmd_reference(x1, x2, n_moments)

    d_pad = _round_up(d, _LANE)
    # Aim for ~4 MiB of input per grid step to amortize per-step overhead.
    target_td = (4 * 1024 * 1024) // max(1, rows_total * itemsize)
    target_td = max(_LANE, (target_td // _LANE) * _LANE)
    td = min(d_pad, max_td_budget, target_td)

    # Compute sub-chunk: keep per-array (N, chunk) temporaries near vreg scale.
    chunk = _LANE
    for cand in (256, 512, 1024):
        if td % cand == 0 and max(n1, n2) * cand <= 8192:
            chunk = cand

    rows = _round_up(n_moments, 8)          # sublane-aligned output block rows
    num_tiles = (d + td - 1) // td

    in_bytes = 2 * rows_total * td * itemsize       # both inputs, double-buffered
    vmem_limit = int(min(vmem_cap * 3 // 4,
                         max(16 * 1024 * 1024, 2 * in_bytes + (4 << 20))))

    kernel = functools.partial(_cmd_tile_kernel, n_moments=n_moments,
                               d_total=d, td=td, chunk=chunk, rows=rows)
    partials = pl.pallas_call(
        kernel,
        out_shape=jax.ShapeDtypeStruct((num_tiles * rows, _LANE), jnp.float32),
        grid=(num_tiles,),
        in_specs=[
            pl.BlockSpec((n1, td), lambda i: (0, i)),
            pl.BlockSpec((n2, td), lambda i: (0, i)),
        ],
        out_specs=pl.BlockSpec((rows, _LANE), lambda i: (i, 0)),
        compiler_params=pltpu.CompilerParams(
            dimension_semantics=("parallel",),
            vmem_limit_bytes=vmem_limit,
        ),
    )(x1, x2)

    # Finalize (tiny): CMD = sum_k sqrt(sum over tiles & lanes of d_k^2).
    moment_ssq = partials.reshape(num_tiles, rows, _LANE).sum(axis=(0, 2))
    return jnp.sum(jnp.sqrt(moment_ssq[:n_moments]))


def cmd_reference(x1, x2, n_moments):
    """Pure-JAX reference mirroring the PyTorch module (also the huge-N fallback)."""
    x1 = x1.astype(jnp.float32)
    x2 = x2.astype(jnp.float32)
    mx1 = jnp.mean(x1, axis=0)
    mx2 = jnp.mean(x2, axis=0)
    sx1 = x1 - mx1
    sx2 = x2 - mx2
    scms = jnp.sqrt(jnp.sum((mx1 - mx2) ** 2))
    for i in range(n_moments - 1):
        k = i + 2
        ss1 = jnp.mean(sx1 ** k, axis=0)
        ss2 = jnp.mean(sx2 ** k, axis=0)
        scms = scms + jnp.sqrt(jnp.sum((ss1 - ss2) ** 2))
    return scms


if __name__ == "__main__":
    key = jax.random.PRNGKey(0)
    k1, k2, k3, k4 = jax.random.split(key, 4)
    n_moments = 5

    # Small case matching the module's typical use (batch=8, hidden=32).
    x1 = jax.random.normal(k1, (8, 32), dtype=jnp.float32)
    x2 = 0.5 * jax.random.normal(k2, (8, 32), dtype=jnp.float32) + 0.1
    out = jax.block_until_ready(cmd(x1, x2, n_moments))
    ref = jax.block_until_ready(cmd_reference(x1, x2, n_moments))
    assert jnp.allclose(out, ref, rtol=1e-4, atol=1e-4), (out, ref)

    # Wider, non-multiple-of-128 feature dim exercises the masked edge tile
    # (no wrapper-side padding pass over HBM anymore).
    y1 = jax.random.normal(k3, (16, 1500), dtype=jnp.float32)
    y2 = 0.75 * jax.random.normal(k4, (16, 1500), dtype=jnp.float32) - 0.2
    out2 = jax.block_until_ready(cmd(y1, y2, n_moments))
    ref2 = jax.block_until_ready(cmd_reference(y1, y2, n_moments))
    assert jnp.allclose(out2, ref2, rtol=1e-4, atol=1e-4), (out2, ref2)

    # bf16 inputs are accepted end-to-end (halves HBM traffic for this
    # memory-bound kernel); compare against an f32 reference loosely.
    z1 = y1.astype(jnp.bfloat16)
    z2 = y2.astype(jnp.bfloat16)
    out3 = jax.block_until_ready(cmd(z1, z2, n_moments))
    ref3 = jax.block_until_ready(cmd_reference(z1, z2, n_moments))
    assert jnp.allclose(out3, ref3, rtol=5e-2, atol=5e-2), (out3, ref3)

    print("KERNEL_OK")
</pallas_src>

<mosaic_0001>
module attributes {stable_mosaic.version = 11 : i64} {
  func.func @_cmd_tile_kernel(%arg0: i32, %arg1: memref<8x128xf32, #tpu.memory_space<vmem>>, %arg2: memref<8x128xf32, #tpu.memory_space<vmem>>, %arg3: memref<8x128xf32, #tpu.memory_space<vmem>>) attributes {dimension_semantics = [#tpu.dimension_semantics<parallel>], iteration_bounds = array<i64: 1>, scalar_prefetch = 0 : i64, scratch_operands = 0 : i64, tpu.core_type = #tpu.core_type<tc>, window_params = [{transform_indices = @transform_0, window_bounds = array<i64: 8, 128>}, {transform_indices = @transform_1, window_bounds = array<i64: 8, 128>}, {transform_indices = @transform_2, window_bounds = array<i64: 8, 128>}]} {
    %c128_i32 = arith.constant 128 : i32
    %0 = arith.muli %arg0, %c128_i32 : i32
    %c32_i32 = arith.constant 32 : i32
    %1 = arith.subi %c32_i32, %0 : i32
    %cst = arith.constant 0.000000e+00 : f32
    %2 = vector.broadcast %cst : f32 to vector<1x128xf32>
    %cst_0 = arith.constant 0.000000e+00 : f32
    %3 = vector.broadcast %cst_0 : f32 to vector<1x128xf32>
    %cst_1 = arith.constant 0.000000e+00 : f32
    %4 = vector.broadcast %cst_1 : f32 to vector<1x128xf32>
    %cst_2 = arith.constant 0.000000e+00 : f32
    %5 = vector.broadcast %cst_2 : f32 to vector<1x128xf32>
    %cst_3 = arith.constant 0.000000e+00 : f32
    %6 = vector.broadcast %cst_3 : f32 to vector<1x128xf32>
    %c0 = arith.constant 0 : index
    %c0_4 = arith.constant 0 : index
    %7 = vector.load %arg1[%c0, %c0_4] : memref<8x128xf32, #tpu.memory_space<vmem>>, vector<8x128xf32>
    %c0_5 = arith.constant 0 : index
    %c0_6 = arith.constant 0 : index
    %8 = vector.load %arg2[%c0_5, %c0_6] : memref<8x128xf32, #tpu.memory_space<vmem>>, vector<8x128xf32>
    %9 = tpu.iota {dimensions = array<i32: 1>} : vector<1x128xi32>
    %c0_i32 = arith.constant 0 : i32
    %10 = vector.broadcast %c0_i32 : i32 to vector<1x128xi32>
    %11 = arith.addi %9, %10 : vector<1x128xi32>
    %12 = vector.broadcast %1 : i32 to vector<1x128xi32>
    %13 = arith.cmpi slt, %11, %12 : vector<1x128xi32>
    %cst_7 = arith.constant 0.000000e+00 : f32
    %14 = vector.shape_cast %13 : vector<1x128xi1> to vector<1x128xi1>
    %15 = vector.broadcast %14 : vector<1x128xi1> to vector<8x128xi1>
    %16 = vector.broadcast %cst_7 : f32 to vector<8x128xf32>
    %17 = arith.select %15, %7, %16 : vector<8x128xi1>, vector<8x128xf32>
    %cst_8 = arith.constant 0.000000e+00 : f32
    %18 = vector.shape_cast %13 : vector<1x128xi1> to vector<1x128xi1>
    %19 = vector.broadcast %18 : vector<1x128xi1> to vector<8x128xi1>
    %20 = vector.broadcast %cst_8 : f32 to vector<8x128xf32>
    %21 = arith.select %19, %8, %20 : vector<8x128xi1>, vector<8x128xf32>
    %cst_9 = arith.constant dense<0.000000e+00> : vector<128xf32>
    %22 = vector.multi_reduction <add>, %17, %cst_9 [0] : vector<8x128xf32> to vector<128xf32>
    %23 = vector.shape_cast %22 : vector<128xf32> to vector<1x128xf32>
    %cst_10 = arith.constant 1.250000e-01 : f32
    %24 = vector.broadcast %cst_10 : f32 to vector<1x128xf32>
    %25 = arith.mulf %23, %24 : vector<1x128xf32>
    %cst_11 = arith.constant dense<0.000000e+00> : vector<128xf32>
    %26 = vector.multi_reduction <add>, %21, %cst_11 [0] : vector<8x128xf32> to vector<128xf32>
    %27 = vector.shape_cast %26 : vector<128xf32> to vector<1x128xf32>
    %cst_12 = arith.constant 1.250000e-01 : f32
    %28 = vector.broadcast %cst_12 : f32 to vector<1x128xf32>
    %29 = arith.mulf %27, %28 : vector<1x128xf32>
    %30 = vector.broadcast %25 : vector<1x128xf32> to vector<8x128xf32>
    %31 = arith.subf %17, %30 : vector<8x128xf32>
    %32 = vector.broadcast %29 : vector<1x128xf32> to vector<8x128xf32>
    %33 = arith.subf %21, %32 : vector<8x128xf32>
    %34 = arith.subf %25, %29 : vector<1x128xf32>
    %35 = arith.mulf %34, %34 : vector<1x128xf32>
    %36 = arith.addf %2, %35 : vector<1x128xf32>
    %37 = arith.mulf %31, %31 : vector<8x128xf32>
    %38 = arith.mulf %33, %33 : vector<8x128xf32>
    %cst_13 = arith.constant dense<0.000000e+00> : vector<128xf32>
    %39 = vector.multi_reduction <add>, %37, %cst_13 [0] : vector<8x128xf32> to vector<128xf32>
    %40 = vector.shape_cast %39 : vector<128xf32> to vector<1x128xf32>
    %cst_14 = arith.constant 1.250000e-01 : f32
    %41 = vector.broadcast %cst_14 : f32 to vector<1x128xf32>
    %42 = arith.mulf %40, %41 : vector<1x128xf32>
    %cst_15 = arith.constant dense<0.000000e+00> : vector<128xf32>
    %43 = vector.multi_reduction <add>, %38, %cst_15 [0] : vector<8x128xf32> to vector<128xf32>
    %44 = vector.shape_cast %43 : vector<128xf32> to vector<1x128xf32>
    %cst_16 = arith.constant 1.250000e-01 : f32
    %45 = vector.broadcast %cst_16 : f32 to vector<1x128xf32>
    %46 = arith.mulf %44, %45 : vector<1x128xf32>
    %47 = arith.subf %42, %46 : vector<1x128xf32>
    %48 = arith.mulf %47, %47 : vector<1x128xf32>
    %49 = arith.addf %3, %48 : vector<1x128xf32>
    %50 = arith.mulf %37, %31 : vector<8x128xf32>
    %51 = arith.mulf %38, %33 : vector<8x128xf32>
    %cst_17 = arith.constant dense<0.000000e+00> : vector<128xf32>
    %52 = vector.multi_reduction <add>, %50, %cst_17 [0] : vector<8x128xf32> to vector<128xf32>
    %53 = vector.shape_cast %52 : vector<128xf32> to vector<1x128xf32>
    %cst_18 = arith.constant 1.250000e-01 : f32
    %54 = vector.broadcast %cst_18 : f32 to vector<1x128xf32>
    %55 = arith.mulf %53, %54 : vector<1x128xf32>
    %cst_19 = arith.constant dense<0.000000e+00> : vector<128xf32>
    %56 = vector.multi_reduction <add>, %51, %cst_19 [0] : vector<8x128xf32> to vector<128xf32>
    %57 = vector.shape_cast %56 : vector<128xf32> to vector<1x128xf32>
    %cst_20 = arith.constant 1.250000e-01 : f32
    %58 = vector.broadcast %cst_20 : f32 to vector<1x128xf32>
    %59 = arith.mulf %57, %58 : vector<1x128xf32>
    %60 = arith.subf %55, %59 : vector<1x128xf32>
    %61 = arith.mulf %60, %60 : vector<1x128xf32>
    %62 = arith.addf %4, %61 : vector<1x128xf32>
    %63 = arith.mulf %50, %31 : vector<8x128xf32>
    %64 = arith.mulf %51, %33 : vector<8x128xf32>
    %cst_21 = arith.constant dense<0.000000e+00> : vector<128xf32>
    %65 = vector.multi_reduction <add>, %63, %cst_21 [0] : vector<8x128xf32> to vector<128xf32>
    %66 = vector.shape_cast %65 : vector<128xf32> to vector<1x128xf32>
    %cst_22 = arith.constant 1.250000e-01 : f32
    %67 = vector.broadcast %cst_22 : f32 to vector<1x128xf32>
    %68 = arith.mulf %66, %67 : vector<1x128xf32>
    %cst_23 = arith.constant dense<0.000000e+00> : vector<128xf32>
    %69 = vector.multi_reduction <add>, %64, %cst_23 [0] : vector<8x128xf32> to vector<128xf32>
    %70 = vector.shape_cast %69 : vector<128xf32> to vector<1x128xf32>
    %cst_24 = arith.constant 1.250000e-01 : f32
    %71 = vector.broadcast %cst_24 : f32 to vector<1x128xf32>
    %72 = arith.mulf %70, %71 : vector<1x128xf32>
    %73 = arith.subf %68, %72 : vector<1x128xf32>
    %74 = arith.mulf %73, %73 : vector<1x128xf32>
    %75 = arith.addf %5, %74 : vector<1x128xf32>
    %76 = arith.mulf %63, %31 : vector<8x128xf32>
    %77 = arith.mulf %64, %33 : vector<8x128xf32>
    %cst_25 = arith.constant dense<0.000000e+00> : vector<128xf32>
    %78 = vector.multi_reduction <add>, %76, %cst_25 [0] : vector<8x128xf32> to vector<128xf32>
    %79 = vector.shape_cast %78 : vector<128xf32> to vector<1x128xf32>
    %cst_26 = arith.constant 1.250000e-01 : f32
    %80 = vector.broadcast %cst_26 : f32 to vector<1x128xf32>
    %81 = arith.mulf %79, %80 : vector<1x128xf32>
    %cst_27 = arith.constant dense<0.000000e+00> : vector<128xf32>
    %82 = vector.multi_reduction <add>, %77, %cst_27 [0] : vector<8x128xf32> to vector<128xf32>
    %83 = vector.shape_cast %82 : vector<128xf32> to vector<1x128xf32>
    %cst_28 = arith.constant 1.250000e-01 : f32
    %84 = vector.broadcast %cst_28 : f32 to vector<1x128xf32>
    %85 = arith.mulf %83, %84 : vector<1x128xf32>
    %86 = arith.subf %81, %85 : vector<1x128xf32>
    %87 = arith.mulf %86, %86 : vector<1x128xf32>
    %88 = arith.addf %6, %87 : vector<1x128xf32>
    %cst_29 = arith.constant 0.000000e+00 : f32
    %89 = vector.broadcast %cst_29 : f32 to vector<1x128xf32>
    %90 = tpu.concatenate %36, %49, %62, %75, %88, %89, %89, %89 in 0 : vector<1x128xf32>, vector<1x128xf32>, vector<1x128xf32>, vector<1x128xf32>, vector<1x128xf32>, vector<1x128xf32>, vector<1x128xf32>, vector<1x128xf32> -> vector<8x128xf32>
    %c0_30 = arith.constant 0 : index
    %c0_31 = arith.constant 0 : index
    %91 = vector.load %arg3[%c0_30, %c0_31] : memref<8x128xf32, #tpu.memory_space<vmem>>, vector<8x128xf32>
    tpu.vector_store %arg3[%c0_30, %c0_31], %90 {strides = array<i32>} : memref<8x128xf32, #tpu.memory_space<vmem>>, vector<8x128xf32>,
    return
  }
  func.func @transform_0(%arg0: i32) -> (i32, i32) {
    %c0_i32 = arith.constant 0 : i32
    %c0_i32_0 = arith.constant 0 : i32
    return %c0_i32, %arg0 : i32, i32
  }
  func.func @transform_1(%arg0: i32) -> (i32, i32) {
    %c0_i32 = arith.constant 0 : i32
    %c0_i32_0 = arith.constant 0 : i32
    return %c0_i32, %arg0 : i32, i32
  }
  func.func @transform_2(%arg0: i32) -> (i32, i32) {
    %c0_i32 = arith.constant 0 : i32
    %c0_i32_0 = arith.constant 0 : i32
    return %arg0, %c0_i32 : i32, i32
  }
}

</mosaic_0001>

<bundles_post_ra>
// kernel: tpu_custom_call.1
= control target key start
LH: loop header
LB: loop body
LE: loop exit
PB: predicated region body
PF: predicated region fallthrough
CT: control target
= control target key end

     0   :  { %7 = vsyncpa [#allocation3], 0  ;;  %s304_s0 = inlined_call_operand.hbm [shape: f32[8,32], index: 0, kind: input, shape index: {}]   ;;  %s305_s1 = inlined_call_operand.hbm [shape: f32[8,32], index: 1, kind: input, shape index: {}]   ;;  %s306_s2 = inlined_call_operand.hbm [shape: f32[8,128], index: 2, kind: output, shape index: {}]  }
   0x1   :  { %8 = vsyncpa [#allocation6], 0 }
   0x2   :  { %9 = vsyncpa [#allocation4], 0  ;;  %s249_s9 = smov [#allocation2]   ;;  %s250_s11 = smov [#allocation5]  }
   0x3   :  { %s16_s10 = sshll.u32 %s249_s9, 4  ;;  %s26_s12 = sshll.u32 %s250_s11, 4  ;;  %s17_s10 = int_to_ptr.vmem [resolvable:$true] %s16_s10  ;;  %s27_s12 = int_to_ptr.vmem [resolvable:$true] %s26_s12 }
   0x4   :  { %s177_s15 = scalar_lea.hbm %s304_s0, 128 }
   0x5   :  { %p178_p0 = scmp.ne.s32.totalorder %s304_s0, %s177_s15  ;;  %p181_p1 = scmp.lt.u32.totalorder %s177_s15, %s304_s0 }
   0x7   :  { %p183_p2 = pnand %p181_p1, %p178_p0 }
   0x9   :  { %186 = shalt.err (!%p183_p2)
}
   0xa   :  { %s187_s20 = scalar_lea.vmem %s17_s10, 128  ;;  %p192_p4 = scmp.lt.s32.totalorder %s17_s10, %s17_s10 }
   0xb   :  { %p188_p3 = scmp.ne.s32.totalorder %s17_s10, %s187_s20  ;;  %p193_p5 = scmp.lt.s32.totalorder %s187_s20, %s187_s20 }
   0xd   :  { %p194_p6 = por %p193_p5, %p192_p4 }
   0xf   :  { %p195_p7 = pnand %p194_p6, %p188_p3 }
  0x11   :  { %198 = shalt.err (!%p195_p7)
}
  0x12   :  { %19 = dma.hbm_to_vmem [thread:$0]  %s304_s0, 128, %s17_s10, [#allocation3]  }
  0x13   :  { %s199_s25 = scalar_lea.hbm %s305_s1, 128 }
  0x14   :  { %p200_p8 = scmp.ne.s32.totalorder %s305_s1, %s199_s25  ;;  %p203_p9 = scmp.lt.u32.totalorder %s199_s25, %s305_s1 }
  0x16   :  { %p205_p10 = pnand %p203_p9, %p200_p8 }
  0x18   :  { %208 = shalt.err (!%p205_p10)
}
  0x19   :  { %s209_s30 = scalar_lea.vmem %s27_s12, 128  ;;  %p214_p12 = scmp.lt.s32.totalorder %s27_s12, %s27_s12 }
  0x1a   :  { %p210_p11 = scmp.ne.s32.totalorder %s27_s12, %s209_s30  ;;  %p215_p13 = scmp.lt.s32.totalorder %s209_s30, %s209_s30 }
  0x1c   :  { %p216_p0 = por %p215_p13, %p214_p12 }
  0x1e   :  { %p217_p1 = pnand %p216_p0, %p210_p11 }
  0x20   :  { %220 = shalt.err (!%p217_p1)
}
  0x21   :  { %29 = dma.hbm_to_vmem [thread:$0]  %s305_s1, 128, %s27_s12, [#allocation6]  }
  0x22   :  { %243 = dma.done.wait [#allocation3], 128  }
  0x23   :  { %244 = vsyncadd [#allocation3], 4294967168 }
  0x24   :  { %245 = dma.done.wait [#allocation6], 128  }
  0x25   :  { %246 = vsyncadd [#allocation6], 4294967168  ;;  %v40_v0 = vlaneseq  ;;  %v38_v2 = vld [vmem:[#allocation2] sm:$0xff]  ;;  %v39_v3 = vld [vmem:[#allocation5] sm:$0xff]  ;;  %vm143_vm1 = vcmask 1040384   ;;  %vm145_vm2 = vcmask 1041408  }
  0x26   :  { %vm147_vm3 = vcmask 1042432   ;;  %vm149_vm4 = vcmask 1043456   ;;  %vm151_vm5 = vcmask 1044480   ;;  %vm153_vm6 = vcmask 1045504   ;;  %s251_s1 = smov [#allocation7]  }
  0x27   :  { %v41_v1 = vand.u32 127, %v40_v0  ;;  %s164_s4 = sshll.u32 %s251_s1, 4  ;;  %vm155_vm7 = vcmask 1046528   ;;  %s165_s4 = int_to_ptr.vmem [resolvable:$true] %s164_s4 }
  0x28   :  { %s221_s5 = scalar_lea.vmem %s165_s4, 128  ;;  %p226_p3 = scmp.lt.s32.totalorder %s165_s4, %s165_s4 }
  0x29   :  { %vm43_vm0 = vcmp.lt.s32.totalorder %v41_v1, 32  ;;  %p222_p2 = scmp.ne.s32.totalorder %s165_s4, %s221_s5  ;;  %p227_p4 = scmp.lt.s32.totalorder %s221_s5, %s221_s5 }
  0x2a   :  { %v46_v4 = vsel %vm43_vm0, %v38_v2, 0.0  ;;  %v47_v5 = vsel %vm43_vm0, %v39_v3, 0.0 }
  0x2b   :  { %v48_v6 = vrot.slane %v46_v4, 4  ;;  %v55_v7 = vrot.slane %v47_v5, 4  ;;  %p228_p5 = por %p227_p4, %p226_p3 }
  0x2d   :  { %v49_v8 = vadd.f32 %v48_v6, %v46_v4  ;;  %v56_v9 = vadd.f32 %v55_v7, %v47_v5  ;;  %p229_p6 = pnand %p228_p5, %p222_p2 }
  0x2f   :  { %v50_v10 = vrot.slane %v49_v8, 2  ;;  %v57_v11 = vrot.slane %v56_v9, 2 }
  0x31   :  { %v51_v12 = vadd.f32 %v50_v10, %v49_v8  ;;  %v58_v13 = vadd.f32 %v57_v11, %v56_v9 }
  0x33   :  { %v52_v14 = vrot.slane %v51_v12, 1  ;;  %v59_v15 = vrot.slane %v58_v13, 1 }
  0x35   :  { %v53_v16 = vadd.f32 %v52_v14, %v51_v12  ;;  %v60_v17 = vadd.f32 %v59_v15, %v58_v13 }
  0x37   :  { %v54_v18 = vmul.f32 0.125, %v53_v16  ;;  %v61_v19 = vmul.f32 0.125, %v60_v17 }
  0x39   :  { %v62_v20 = vsub.f32 %v46_v4, %v54_v18  ;;  %v63_v21 = vsub.f32 %v47_v5, %v61_v19  ;;  %v64_v32 = vsub.f32 %v54_v18, %v61_v19 }
  0x3b   :  { %v67_v22 = vmul.f32 %v62_v20, %v62_v20  ;;  %v68_v23 = vmul.f32 %v63_v21, %v63_v21  ;;  %v65_v11 = vmul.f32 %v64_v32, %v64_v32 }
  0x3d   :  { %v69_v24 = vrot.slane %v67_v22, 4  ;;  %v76_v25 = vrot.slane %v68_v23, 4  ;;  %v86_v26 = vmul.f32 %v67_v22, %v62_v20  ;;  %v87_v27 = vmul.f32 %v68_v23, %v63_v21 }
  0x3f   :  { %v70_v28 = vadd.f32 %v69_v24, %v67_v22  ;;  %v77_v29 = vadd.f32 %v76_v25, %v68_v23  ;;  %v88_v30 = vrot.slane %v86_v26, 4  ;;  %v95_v31 = vrot.slane %v87_v27, 4 }
  0x40   :  { %v105_v33 = vmul.f32 %v86_v26, %v62_v20  ;;  %v106_v34 = vmul.f32 %v87_v27, %v63_v21 }
  0x41   :  { %v71_v35 = vrot.slane %v70_v28, 2  ;;  %v78_v36 = vrot.slane %v77_v29, 2  ;;  %v89_v37 = vadd.f32 %v88_v30, %v86_v26  ;;  %v96_v38 = vadd.f32 %v95_v31, %v87_v27 }
  0x42   :  { %v107_v39 = vrot.slane %v105_v33, 4  ;;  %v114_v40 = vrot.slane %v106_v34, 4  ;;  %v124_v41 = vmul.f32 %v105_v33, %v62_v20  ;;  %v125_v42 = vmul.f32 %v106_v34, %v63_v21 }
  0x43   :  { %v72_v43 = vadd.f32 %v71_v35, %v70_v28  ;;  %v79_v44 = vadd.f32 %v78_v36, %v77_v29  ;;  %v90_v45 = vrot.slane %v89_v37, 2  ;;  %v97_v46 = vrot.slane %v96_v38, 2 }
  0x44   :  { %v108_v47 = vadd.f32 %v107_v39, %v105_v33  ;;  %v115_v48 = vadd.f32 %v114_v40, %v106_v34  ;;  %v126_v49 = vrot.slane %v124_v41, 4  ;;  %v133_v50 = vrot.slane %v125_v42, 4 }
  0x45   :  { %v73_v51 = vrot.slane %v72_v43, 1  ;;  %v80_v52 = vrot.slane %v79_v44, 1  ;;  %v91_v53 = vadd.f32 %v90_v45, %v89_v37  ;;  %v98_v54 = vadd.f32 %v97_v46, %v96_v38 }
  0x46   :  { %v109_v55 = vrot.slane %v108_v47, 2  ;;  %v116_v56 = vrot.slane %v115_v48, 2  ;;  %v127_v57 = vadd.f32 %v126_v49, %v124_v41  ;;  %v134_v58 = vadd.f32 %v133_v50, %v125_v42 }
  0x47   :  { %v74_v59 = vadd.f32 %v73_v51, %v72_v43  ;;  %v81_v60 = vadd.f32 %v80_v52, %v79_v44  ;;  %v92_v61 = vrot.slane %v91_v53, 1  ;;  %v99_v62 = vrot.slane %v98_v54, 1 }
  0x48   :  { %v110_v63 = vadd.f32 %v109_v55, %v108_v47  ;;  %v117_v0 = vadd.f32 %v116_v56, %v115_v48  ;;  %v128_v1 = vrot.slane %v127_v57, 2  ;;  %v135_v2 = vrot.slane %v134_v58, 2 }
  0x49   :  { %v75_v3 = vmul.f32 0.125, %v74_v59  ;;  %v82_v4 = vmul.f32 0.125, %v81_v60  ;;  %v93_v5 = vadd.f32 %v92_v61, %v91_v53  ;;  %v100_v6 = vadd.f32 %v99_v62, %v98_v54 }
  0x4a   :  { %v111_v7 = vrot.slane %v110_v63, 1  ;;  %v118_v8 = vrot.slane %v117_v0, 1  ;;  %v129_v9 = vadd.f32 %v128_v1, %v127_v57  ;;  %v136_v10 = vadd.f32 %v135_v2, %v134_v58 }
  0x4b   :  { %v83_v12 = vsub.f32 %v75_v3, %v82_v4  ;;  %v94_v13 = vmul.f32 0.125, %v93_v5  ;;  %v101_v14 = vmul.f32 0.125, %v100_v6 }
  0x4c   :  { %v112_v15 = vadd.f32 %v111_v7, %v110_v63  ;;  %v119_v16 = vadd.f32 %v118_v8, %v117_v0  ;;  %v130_v17 = vrot.slane %v129_v9, 1  ;;  %v137_v18 = vrot.slane %v136_v10, 1 }
  0x4d   :  { %v84_v19 = vmul.f32 %v83_v12, %v83_v12  ;;  %v102_v20 = vsub.f32 %v94_v13, %v101_v14 }
  0x4e   :  { %v113_v21 = vmul.f32 0.125, %v112_v15  ;;  %v120_v22 = vmul.f32 0.125, %v119_v16  ;;  %v131_v23 = vadd.f32 %v130_v17, %v129_v9  ;;  %v138_v24 = vadd.f32 %v137_v18, %v136_v10 }
  0x4f   :  { %v103_v25 = vmul.f32 %v102_v20, %v102_v20  ;;  %v144_v26 = vsel %vm143_vm1, %v65_v11, %v84_v19 }
  0x50   :  { %v121_v27 = vsub.f32 %v113_v21, %v120_v22  ;;  %v132_v28 = vmul.f32 0.125, %v131_v23  ;;  %v139_v29 = vmul.f32 0.125, %v138_v24 }
  0x51   :  { %v146_v30 = vsel %vm145_vm2, %v144_v26, %v103_v25 }
  0x52   :  { %v122_v31 = vmul.f32 %v121_v27, %v121_v27  ;;  %v140_v32 = vsub.f32 %v132_v28, %v139_v29 }
  0x54   :  { %v141_v33 = vmul.f32 %v140_v32, %v140_v32  ;;  %v148_v34 = vsel %vm147_vm3, %v146_v30, %v122_v31 }
  0x56   :  { %v150_v35 = vsel %vm149_vm4, %v148_v34, %v141_v33 }
  0x57   :  { %v152_v36 = vsel %vm151_vm5, %v150_v35, 0.0 }
  0x58   :  { %v154_v37 = vsel %vm153_vm6, %v152_v36, 0.0 }
  0x59   :  { %v156_v38 = vsel %vm155_vm7, %v154_v37, 0.0 }
  0x5a   :  { %157 = vst [vmem:[#allocation7] sm:$0xff] %v156_v38 }
  0x5b   :  { %232 = shalt.err (!%p229_p6)
}
  0x5c   :  { %s233_s8 = scalar_lea.hbm %s306_s2, 128 }
  0x5d   :  { %p234_p7 = scmp.ne.s32.totalorder %s306_s2, %s233_s8  ;;  %p237_p8 = scmp.lt.u32.totalorder %s233_s8, %s306_s2 }
  0x5f   :  { %p239_p9 = pnand %p237_p8, %p234_p7 }
  0x61   :  { %242 = shalt.err (!%p239_p9)
}
  0x62   :  { %167 = dma.vmem_to_hbm [thread:$0]  %s165_s4, 128, %s306_s2, [#allocation4]  }
  0x63   :  { %247 = dma.done.wait [#allocation4], 128  }
  0x64   :  { %248 = vsyncadd [#allocation4], 4294967168 }
  0x65   :  { %171 = vsyncpa [#allocation3], 1 }
  0x66   :  { %172 = vsyncpa [#allocation6], 1 }
  0x67   :  { %173 = vsyncpa [#allocation4], 1 }

</bundles_post_ra>
